<compile_context>
chip_gen: v5e
topology: v5e:2x2
jax: 0.10.0
libtpu: 0.0.40
codegen_flags: <defaults>
</compile_context>

<pallas_src>
import math

import jax
import jax.numpy as jnp
from jax.experimental import pallas as pl
from jax.experimental.pallas import tpu as pltpu


# ------------------------------ kernel body ---------------------------------

def _erf_f32(z):
    # Abramowitz & Stegun 7.1.26 rational approximation, |error| < 1.5e-7.
    a1, a2, a3, a4, a5 = (0.254829592, -0.284496736, 1.421413741,
                          -1.453152027, 1.061405429)
    p = 0.3275911
    sgn = jnp.where(z < 0.0, -1.0, 1.0)
    az = jnp.abs(z)
    t = 1.0 / (1.0 + p * az)
    poly = ((((a5 * t + a4) * t + a3) * t + a2) * t + a1) * t
    return sgn * (1.0 - poly * jnp.exp(-az * az))


def _dense_gelu_kernel(x_ref, w_ref, b_ref, o_ref):
    # x: (tr, H)  w: (H, tn)  b: (1, tn)  ->  o: (tr, tn)
    acc = jnp.dot(x_ref[...], w_ref[...], preferred_element_type=jnp.float32)
    h = acc + b_ref[...].astype(jnp.float32)
    # exact-erf GELU: x * 0.5 * (1 + erf(x / sqrt(2)))
    g = h * 0.5 * (1.0 + _erf_f32(h * (1.0 / math.sqrt(2.0))))
    o_ref[...] = g.astype(o_ref.dtype)


# ------------------------------ tiling helpers -------------------------------

def _pick_tile(dim, max_tile, align):
    """Largest multiple of `align` that divides `dim` and is <= max_tile.

    Falls back to the full axis (always legal: full-extent blocks satisfy the
    (8,128) rule regardless of size)."""
    if dim <= max_tile:
        return dim
    t = max_tile - (max_tile % align)
    while t >= align:
        if dim % t == 0:
            return t
        t -= align
    return dim


# ------------------------------ wrapper --------------------------------------

def bert_intermediate(x, w, b, *, block_rows=512, block_cols=512, use_bf16=True):
    """x: (..., H), w: (H, I), b: (I,) -> gelu(x @ w + b), shape (..., I), f32."""
    lead = x.shape[:-1]
    H = x.shape[-1]
    I = w.shape[1]
    R = int(math.prod(lead)) if lead else 1
    x2 = x.reshape(R, H)

    if use_bf16:
        x2 = x2.astype(jnp.bfloat16)
        w = w.astype(jnp.bfloat16)
    b2 = b.reshape(1, I).astype(jnp.float32)

    tr = _pick_tile(R, block_rows, 8)     # sublane-aligned row tile
    tn = _pick_tile(I, block_cols, 128)   # lane-dense column tile
    grid = (R // tr, I // tn)

    in_bytes = x2.size * x2.dtype.itemsize + w.size * w.dtype.itemsize + b2.size * 4
    out_bytes = R * I * 4
    cost = pl.CostEstimate(flops=2 * R * H * I,
                           transcendentals=R * I,
                           bytes_accessed=in_bytes + out_bytes)

    out = pl.pallas_call(
        _dense_gelu_kernel,
        out_shape=jax.ShapeDtypeStruct((R, I), jnp.float32),
        grid=grid,
        in_specs=[
            pl.BlockSpec((tr, H), lambda i, j: (i, 0)),   # activation tile (revisited over j)
            pl.BlockSpec((H, tn), lambda i, j: (0, j)),   # weight column tile (streamed)
            pl.BlockSpec((1, tn), lambda i, j: (0, j)),   # bias column tile
        ],
        out_specs=pl.BlockSpec((tr, tn), lambda i, j: (i, j)),
        compiler_params=pltpu.CompilerParams(
            dimension_semantics=("parallel", "parallel"),
            vmem_limit_bytes=64 << 20),
        cost_estimate=cost,
    )(x2, w, b2)

    return out.reshape(*lead, I)


# ------------------------------ parameter init -------------------------------

def init_params(key, hidden_size, intermediate_size):
    # nn.Linear default init: kaiming_uniform(a=sqrt(5)) -> bound = 1/sqrt(fan_in);
    # bias uniform(-1/sqrt(fan_in), 1/sqrt(fan_in)).
    kw, kb = jax.random.split(key)
    bound = 1.0 / math.sqrt(hidden_size)
    w = jax.random.uniform(kw, (hidden_size, intermediate_size), jnp.float32,
                           minval=-bound, maxval=bound)
    b = jax.random.uniform(kb, (intermediate_size,), jnp.float32,
                           minval=-bound, maxval=bound)
    return w, b


# ---------------------------------- main -------------------------------------

if __name__ == "__main__":
    # Small shapes consistent with BertIntermediate (intermediate = 4 * hidden).
    B, S, H, I = 2, 8, 256, 1024

    key = jax.random.PRNGKey(0)
    k_x, k_p = jax.random.split(key)
    x = jax.random.normal(k_x, (B, S, H), jnp.float32)
    w, b = init_params(k_p, H, I)

    out = bert_intermediate(x, w, b)
    jax.block_until_ready(out)
    assert out.shape == (B, S, I), out.shape

    # Pure-JAX f32 reference (exact erf-based GELU).
    hf = x.reshape(-1, H) @ w + b
    ref = (hf * 0.5 * (1.0 + jax.scipy.special.erf(hf / math.sqrt(2.0)))).reshape(B, S, I)
    max_err = float(jnp.max(jnp.abs(out - ref)))
    assert jnp.allclose(out, ref, rtol=2e-2, atol=2e-2), f"max_err={max_err}"

    print("KERNEL_OK")
</pallas_src>

<mosaic_0001>
module attributes {stable_mosaic.version = 11 : i64} {
  func.func @_dense_gelu_kernel(%arg0: i32, %arg1: i32, %arg2: memref<16x256xbf16, #tpu.memory_space<vmem>>, %arg3: memref<256x512xbf16, #tpu.memory_space<vmem>>, %arg4: memref<1x512xf32, #tpu.memory_space<vmem>>, %arg5: memref<16x512xf32, #tpu.memory_space<vmem>>) attributes {dimension_semantics = [#tpu.dimension_semantics<parallel>, #tpu.dimension_semantics<parallel>], iteration_bounds = array<i64: 1, 2>, scalar_prefetch = 0 : i64, scratch_operands = 0 : i64, tpu.core_type = #tpu.core_type<tc>, window_params = [{transform_indices = @transform_0, window_bounds = array<i64: 16, 256>}, {transform_indices = @transform_1, window_bounds = array<i64: 256, 512>}, {transform_indices = @transform_2, window_bounds = array<i64: 1, 512>}, {transform_indices = @transform_3, window_bounds = array<i64: 16, 512>}]} {
    %c0 = arith.constant 0 : index
    %c0_0 = arith.constant 0 : index
    %0 = vector.load %arg2[%c0, %c0_0] : memref<16x256xbf16, #tpu.memory_space<vmem>>, vector<16x256xbf16>
    %c0_1 = arith.constant 0 : index
    %c0_2 = arith.constant 0 : index
    %1 = vector.load %arg3[%c0_1, %c0_2] : memref<256x512xbf16, #tpu.memory_space<vmem>>, vector<256x512xbf16>
    %cst = arith.constant dense<0.000000e+00> : vector<16x512xf32>
    %2 = tpu.matmul %0, %1, %cst {dimension_numbers = #tpu.dot_dimension_numbers<[1], [0], [0], [1], [0, 0, 1, 1], [], []>} : vector<16x256xbf16>, vector<256x512xbf16>, vector<16x512xf32> -> vector<16x512xf32>
    %c0_3 = arith.constant 0 : index
    %c0_4 = arith.constant 0 : index
    %3 = vector.load %arg4[%c0_3, %c0_4] : memref<1x512xf32, #tpu.memory_space<vmem>>, vector<1x512xf32>
    %4 = vector.broadcast %3 : vector<1x512xf32> to vector<16x512xf32>
    %5 = arith.addf %2, %4 : vector<16x512xf32>
    %cst_5 = arith.constant 5.000000e-01 : f32
    %6 = vector.broadcast %cst_5 : f32 to vector<16x512xf32>
    %7 = arith.mulf %5, %6 : vector<16x512xf32>
    %cst_6 = arith.constant 0.707106769 : f32
    %8 = vector.broadcast %cst_6 : f32 to vector<16x512xf32>
    %9 = arith.mulf %5, %8 : vector<16x512xf32>
    %cst_7 = arith.constant 0.000000e+00 : f32
    %10 = vector.broadcast %cst_7 : f32 to vector<16x512xf32>
    %11 = arith.cmpf olt, %9, %10 : vector<16x512xf32>
    %cst_8 = arith.constant -1.000000e+00 : f32
    %cst_9 = arith.constant 1.000000e+00 : f32
    %12 = vector.broadcast %cst_8 : f32 to vector<16x512xf32>
    %13 = vector.broadcast %cst_9 : f32 to vector<16x512xf32>
    %14 = arith.select %11, %12, %13 : vector<16x512xi1>, vector<16x512xf32>
    %15 = math.absf %9 : vector<16x512xf32>
    %cst_10 = arith.constant 0.327591091 : f32
    %16 = vector.broadcast %cst_10 : f32 to vector<16x512xf32>
    %17 = arith.mulf %16, %15 : vector<16x512xf32>
    %cst_11 = arith.constant 1.000000e+00 : f32
    %18 = vector.broadcast %cst_11 : f32 to vector<16x512xf32>
    %19 = arith.addf %18, %17 : vector<16x512xf32>
    %cst_12 = arith.constant 1.000000e+00 : f32
    %20 = vector.broadcast %cst_12 : f32 to vector<16x512xf32>
    %21 = arith.divf %20, %19 : vector<16x512xf32>
    %cst_13 = arith.constant 1.06140542 : f32
    %22 = vector.broadcast %cst_13 : f32 to vector<16x512xf32>
    %23 = arith.mulf %22, %21 : vector<16x512xf32>
    %cst_14 = arith.constant -1.45315206 : f32
    %24 = vector.broadcast %cst_14 : f32 to vector<16x512xf32>
    %25 = arith.addf %23, %24 : vector<16x512xf32>
    %26 = arith.mulf %25, %21 : vector<16x512xf32>
    %cst_15 = arith.constant 1.42141378 : f32
    %27 = vector.broadcast %cst_15 : f32 to vector<16x512xf32>
    %28 = arith.addf %26, %27 : vector<16x512xf32>
    %29 = arith.mulf %28, %21 : vector<16x512xf32>
    %cst_16 = arith.constant -0.284496725 : f32
    %30 = vector.broadcast %cst_16 : f32 to vector<16x512xf32>
    %31 = arith.addf %29, %30 : vector<16x512xf32>
    %32 = arith.mulf %31, %21 : vector<16x512xf32>
    %cst_17 = arith.constant 0.254829586 : f32
    %33 = vector.broadcast %cst_17 : f32 to vector<16x512xf32>
    %34 = arith.addf %32, %33 : vector<16x512xf32>
    %35 = arith.mulf %34, %21 : vector<16x512xf32>
    %cst_18 = arith.constant 0.000000e+00 : f32
    %36 = vector.broadcast %cst_18 : f32 to vector<16x512xf32>
    %37 = arith.subf %36, %15 : vector<16x512xf32>
    %38 = arith.mulf %37, %15 : vector<16x512xf32>
    %39 = math.exp %38 : vector<16x512xf32>
    %40 = arith.mulf %35, %39 : vector<16x512xf32>
    %cst_19 = arith.constant 1.000000e+00 : f32
    %41 = vector.broadcast %cst_19 : f32 to vector<16x512xf32>
    %42 = arith.subf %41, %40 : vector<16x512xf32>
    %43 = arith.mulf %14, %42 : vector<16x512xf32>
    %cst_20 = arith.constant 1.000000e+00 : f32
    %44 = vector.broadcast %cst_20 : f32 to vector<16x512xf32>
    %45 = arith.addf %44, %43 : vector<16x512xf32>
    %46 = arith.mulf %7, %45 : vector<16x512xf32>
    %c0_21 = arith.constant 0 : index
    %c0_22 = arith.constant 0 : index
    %47 = vector.load %arg5[%c0_21, %c0_22] : memref<16x512xf32, #tpu.memory_space<vmem>>, vector<16x512xf32>
    tpu.vector_store %arg5[%c0_21, %c0_22], %46 {strides = array<i32>} : memref<16x512xf32, #tpu.memory_space<vmem>>, vector<16x512xf32>,
    return
  }
  func.func @transform_0(%arg0: i32, %arg1: i32) -> (i32, i32) {
    %c0_i32 = arith.constant 0 : i32
    %c0_i32_0 = arith.constant 0 : i32
    return %arg0, %c0_i32 : i32, i32
  }
  func.func @transform_1(%arg0: i32, %arg1: i32) -> (i32, i32) {
    %c0_i32 = arith.constant 0 : i32
    %c0_i32_0 = arith.constant 0 : i32
    return %c0_i32, %arg1 : i32, i32
  }
  func.func @transform_2(%arg0: i32, %arg1: i32) -> (i32, i32) {
    %c0_i32 = arith.constant 0 : i32
    %c0_i32_0 = arith.constant 0 : i32
    return %c0_i32, %arg1 : i32, i32
  }
  func.func @transform_3(%arg0: i32, %arg1: i32) -> (i32, i32) {
    %c0_i32 = arith.constant 0 : i32
    return %arg0, %arg1 : i32, i32
  }
}

</mosaic_0001>

<bundles_post_ra>
// kernel: tpu_custom_call.1
= control target key start
LH: loop header
LB: loop body
LE: loop exit
PB: predicated region body
PF: predicated region fallthrough
CT: control target
= control target key end

     0   :  { %s2464_s0 = inlined_call_operand.hbm [shape: bf16[16,256], index: 0, kind: input, shape index: {}]   ;;  %s2465_s1 = inlined_call_operand.hbm [shape: bf16[256,1024], index: 1, kind: input, shape index: {}]   ;;  %s2466_s2 = inlined_call_operand.hbm [shape: f32[1,1024], index: 2, kind: input, shape index: {}]   ;;  %s2467_s3 = inlined_call_operand.hbm [shape: f32[16,1024], index: 3, kind: output, shape index: {}]  }
   0x1   :  { %2468 = sst [smem:[#allocation12_spill]] %s2464_s0 }
   0x2   :  { %2469 = sst [smem:[#allocation13_spill]] %s2465_s1 }
   0x3   :  { %8 = vsyncpa [#allocation3], 0 }
   0x4   :  { %9 = vsyncpa [#allocation6], 0 }
   0x5   :  { %11 = vsyncpa [#allocation6 + $0x1], 0 }
   0x6   :  { %12 = vsyncpa [#allocation4], 0 }
   0x7   :  { %14 = vsyncpa [#allocation4 + $0x1], 0  ;;  %s1934_s12 = smov 0   ;;  %s1936_s13 = smov 0  }
   0x8   :  { %s1938_s14 = smov 0   ;;  %s1940_s15 = smov 0  }
   0x9   :  { %s1942_s16 = smov 0   ;;  %s1944_s17 = smov 0  }
   0xa LB: > { %s29_s18 = sadd.s32 1, %s1898_s16  ;;  %s65_s19 = sadd.s32 1, %s1890_s14  ;;  %s1902_s17 = sphi %s1944_s17, %s20_s17   ;;  %s1898_s16 = sphi %s1942_s16, %s2486_s16   ;;  %s1894_s15 = sphi %s1940_s15, %s2485_s15   ;;  %s1890_s14 = sphi %s1938_s14, %s2484_s14   ;;  %s1886_s13 = sphi %s1936_s13, %s2483_s13   ;;  %s1882_s12 = sphi %s1934_s12, %s2482_s12  }
   0xb   : > { %p30_p0 = scmp.ge.s32.totalorder %s29_s18, 2  ;;  %p72_p1 = scmp.ne.s32.totalorder %s1890_s14, %s1886_s13 }
   0xc   : > { %p73_p2 = scmp.eq.s32.totalorder %s1902_s17, 0  ;;  %p1259_p3 = scmp.ge.s32.totalorder %s1902_s17, 2 }
   0xd   : > { %s2488_s18 = smov (%p30_p0, %s29_s18), 0  ;;  %p1633_p5 = scmp.lt.s32.totalorder %s1902_s17, 2 }
   0xe   : > { %p1975_p4 = por %p73_p2, %p72_p1  ;;  %s62_s21 = ssub.s32 %s1898_s16, %s2488_s18 }
   0xf   : > { %s174_s22 = sand.u32 1, %s1902_s17   ;;  %p63_p6 = scmp.eq.s32.totalorder %s62_s21, 0 }
  0x10   : > { %s176_s23 = sand.u32 1, %s1890_s14   ;;  %s1539_s24 = sshll.u32 %s1898_s16, 4 }
  0x11   : > { %s1986_s25 = scalar_select %p63_p6, %s1890_s14, %s65_s19  }
  0x12   : > { %s1260_s26 = sshll.u32 %s176_s23, 9  ;;  %s2471_s1 = sld [smem:[#allocation13_spill]] }
  0x13   : > { %s178_s4 = scalar_lea.vmem [#allocation5], %s1260_s26  ;;  %p1997_p7 = pnand %p1633_p5, %p1975_p4 }
  0x14   : > { %s186_s5 = sshll.u32 %s178_s4, 4  ;;  %s2001_s7 = scalar_lea.sflag [#allocation6], %s174_s22  ;;  %s187_s5 = int_to_ptr.vmem [resolvable:$true] %s186_s5 }
  0x15   : > { %s1904_s8 = smov 512   ;;  %s1905_s9 = smov 256  }
  0x16   : > { %s1906_s10 = smov 16   ;;  %s2007_s11 = sadd.s32 4294967295, %s1902_s17  }
  0x17   : > { %s1256_s19 = sadd.s32 4294967294, %s1902_s17   ;;  %p78_p8 = scmp.ne.s32.totalorder %s1886_s13, %s1882_s12 }
  0x18   : > { %s183_s29 = scalar_lea.hbm %s2471_s1, %s1539_s24  ;;  %p79_p9 = scmp.eq.s32.totalorder %s2007_s11, 0 }
  0x19   : > { %s184_s30 = sshll.u32 %s183_s29, 4  ;;  %p130_p10 = scmp.eq.s32.totalorder %s2007_s11, 1  ;;  %s185_s30 = int_to_ptr.hbm [resolvable:$true] %s184_s30 }
  0x1a   : > { %1624 = dma.hbm_to_vmem [thread:$0]  (!%p1997_p7), %s185_s30, 8192, %s187_s5, %s2001_s7, %s1904_s8, %s1905_s9, %s1906_s10  }
  0x1b   : > { %p136_p11 = scmp.eq.s32.totalorder %s1256_s19, 1  ;;  %p2016_p12 = por %p79_p9, %p78_p8 }
  0x1c   : > { %p1257_p13 = scmp.ge.s32.totalorder %s1902_s17, 1  ;;  %p2024_p0 = por %p130_p10, %p72_p1 }
  0x1d   : > { %p2028_p2 = por %p136_p11, %p78_p8  ;;  %p143_p4 = scmp.lt.s32.totalorder %s1902_s17, 3 }
  0x1e   : > { %s2476_s0 = sld [smem:[#allocation12_spill]]  ;;  %s1907_s29 = smov [#allocation2]  }
  0x1f   : > { %p2036_p5 = pnand %p1257_p13, %p143_p4  ;;  %s160_s30 = sshll.u32 %s1907_s29, 4  ;;  %s161_s30 = int_to_ptr.vmem [resolvable:$true] %s160_s30 }
  0x20   : > { %s1263_s4 = sshll.u32 %s176_s23, 2  ;;  %s1264_s5 = sshll.u32 %s1898_s16, 2 }
  0x21   : > { %p1617_p1 = pneg %p2036_p5  ;;  %s200_s8 = scalar_lea.vmem [#allocation7], %s1263_s4 }
  0x22   : > { %s208_s9 = sshll.u32 %s200_s8, 4  ;;  %s204_s24 = scalar_lea.hbm %s2466_s2, %s1264_s5  ;;  %s209_s9 = int_to_ptr.vmem [resolvable:$true] %s208_s9 }
  0x23   : > { %p1618_p6 = pnand %p1617_p1, %p79_p9  ;;  %s1908_s26 = smov 128  }
  0x24   : > { %s158_s27 = sshll.u32 %s2476_s0, 4  ;;  %s1909_s0 = smov 8   ;;  %s159_s27 = int_to_ptr.hbm [resolvable:$true] %s158_s27 }
  0x25   : > { %1620 = dma.hbm_to_vmem [thread:$0]  (!%p1618_p6), %s159_s27, 256, %s161_s30, [#allocation3], %s1908_s26, %s1908_s26, %s1909_s0  }
  0x26   : > { %s206_s1 = sshll.u32 %s204_s24, 4  ;;  %217 = sbr.rel (%p2036_p5) target bundleno = 330 (0x14a), region = 32  ;;  %s207_s1 = int_to_ptr.hbm [resolvable:$true] %s206_s1 }
  0x27   : > { %1627 = dma.hbm_to_vmem [thread:$0]  (!%p1997_p7), %s207_s1, 64, %s209_s9, %s2001_s7  }
  0x2b   : > { %1869 = dma.done.wait (%p79_p9), [#allocation3], 256  }
  0x2c   : > { %1871 = vsyncadd (%p79_p9), [#allocation3], 4294967040  ;;  %s224_s23 = sand.u32 1, %s2007_s11   ;;  %s2061_s29 = sand.u32 1, %s1886_s13  }
  0x2d   : > { %s1267_s0 = sshll.u32 %s2061_s29, 9  ;;  %s225_s27 = scalar_lea.sflag [#allocation6], %s224_s23 }
  0x2e   : > { %s2064_s6 = scalar_lea.vmem [#allocation5], %s1267_s0 }
  0x2f   : > { %1873 = dma.done.wait (%p2016_p12), %s225_s27, 8256  }
  0x30   : > { %1875 = vsyncadd (%p2016_p12), %s225_s27, 4294959040  ;;  %v1392_v0 = vld [vmem:[%s2064_s6 + $0xe0] sm:$0xf]  ;;  %v1572_v1 = vld [vmem:[%s2064_s6 + $0xec] sm:$0xf0]  ;;  %s1268_s1 = sshll.u32 %s2061_s29, 2 }
  0x31   : > { %v1520_v2 = vld [vmem:[%s2064_s6 + $0x1e0] sm:$0xf]  ;;  %v1393_v3 = vor.u32 %v1572_v1, %v1392_v0  ;;  %v1604_v4 = vld [vmem:[%s2064_s6 + $0x1ec] sm:$0xf0]  ;;  %v1570_v5 = vld [vmem:[%s2064_s6 + $0xe4] sm:$0xf] }
  0x32   : > { %v1394_v6 = vld [vmem:[%s2064_s6 + $0xf0] sm:$0xf0]  ;;  %v1521_v7 = vor.u32 %v1604_v4, %v1520_v2  ;;  %v1602_v9 = vld [vmem:[%s2064_s6 + $0x1e4] sm:$0xf]  ;;  %v1376_v11 = vld [vmem:[%s2064_s6 + $0xc0] sm:$0xf] }
  0x33   : > { %v1397_v8 = vor.u32 %v1570_v5, %v1394_v6  ;;  %v1522_v10 = vld [vmem:[%s2064_s6 + $0x1f0] sm:$0xf0]  ;;  %678 = vmatpush.bf16.msra.mxu0 %v1393_v3  ;;  %v1568_v13 = vld [vmem:[%s2064_s6 + $0xcc] sm:$0xf0]  ;;  %v1504_v14 = vld [vmem:[%s2064_s6 + $0x1c0] sm:$0xf] }
  0x34   : > { %v1525_v12 = vor.u32 %v1602_v9, %v1522_v10  ;;  %v1600_v15 = vld [vmem:[%s2064_s6 + $0x1cc] sm:$0xf0]  ;;  %692 = vmatpush.bf16.msra.mxu1 %v1521_v7  ;;  %v1377_v16 = vor.u32 %v1568_v13, %v1376_v11  ;;  %v1566_v18 = vld [vmem:[%s2064_s6 + $0xc4] sm:$0xf]  ;;  %v1378_v19 = vld [vmem:[%s2064_s6 + $0xd0] sm:$0xf0] }
  0x35   : > { %706 = vmatpush.bf16.msra.mxu2 %v1397_v8  ;;  %v1505_v17 = vor.u32 %v1600_v15, %v1504_v14  ;;  %v1598_v20 = vld [vmem:[%s2064_s6 + $0x1c4] sm:$0xf]  ;;  %v1381_v21 = vor.u32 %v1566_v18, %v1378_v19  ;;  %v1506_v22 = vld [vmem:[%s2064_s6 + $0x1d0] sm:$0xf0]  ;;  %v1360_v23 = vld [vmem:[%s2064_s6 + $0xa0] sm:$0xf] }
  0x36   : > { %720 = vmatpush.bf16.msra.mxu3 %v1525_v12  ;;  %v1564_v24 = vld [vmem:[%s2064_s6 + $0xac] sm:$0xf0]  ;;  %v1509_v25 = vor.u32 %v1598_v20, %v1506_v22  ;;  %v1488_v26 = vld [vmem:[%s2064_s6 + $0x1a0] sm:$0xf]  ;;  %v1562_v28 = vld [vmem:[%s2064_s6 + $0xa4] sm:$0xf] }
  0x37   : > { %v1596_v27 = vld [vmem:[%s2064_s6 + $0x1ac] sm:$0xf0]  ;;  %679 = vmatpush.bf16.msra.mxu0 %v1377_v16  ;;  %v1361_v29 = vor.u32 %v1564_v24, %v1360_v23  ;;  %v1362_v30 = vld [vmem:[%s2064_s6 + $0xb0] sm:$0xf0]  ;;  %v1594_v31 = vld [vmem:[%s2064_s6 + $0x1a4] sm:$0xf] }
  0x38   : > { %v1490_v32 = vld [vmem:[%s2064_s6 + $0x1b0] sm:$0xf0]  ;;  %693 = vmatpush.bf16.msra.mxu1 %v1505_v17  ;;  %v1489_v33 = vor.u32 %v1596_v27, %v1488_v26  ;;  %v1365_v34 = vor.u32 %v1562_v28, %v1362_v30  ;;  %v1344_v35 = vld [vmem:[%s2064_s6 + $0x80] sm:$0xf]  ;;  %v1560_v36 = vld [vmem:[%s2064_s6 + $0x8c] sm:$0xf0] }
  0x39   : > { %707 = vmatpush.bf16.msra.mxu2 %v1381_v21  ;;  %v1472_v37 = vld [vmem:[%s2064_s6 + $0x180] sm:$0xf]  ;;  %v1493_v38 = vor.u32 %v1594_v31, %v1490_v32  ;;  %v1592_v39 = vld [vmem:[%s2064_s6 + $0x18c] sm:$0xf0]  ;;  %v1558_v40 = vld [vmem:[%s2064_s6 + $0x84] sm:$0xf]  ;;  %v1345_v44 = vor.u32 %v1560_v36, %v1344_v35 }
  0x3a   : > { %721 = vmatpush.bf16.msra.mxu3 %v1509_v25  ;;  %v1346_v41 = vld [vmem:[%s2064_s6 + $0x90] sm:$0xf0]  ;;  %v1590_v42 = vld [vmem:[%s2064_s6 + $0x184] sm:$0xf]  ;;  %v1473_v45 = vor.u32 %v1592_v39, %v1472_v37  ;;  %v1328_v47 = vld [vmem:[%s2064_s6 + $0x60] sm:$0xf] }
  0x3b   : > { %v1474_v43 = vld [vmem:[%s2064_s6 + $0x190] sm:$0xf0]  ;;  %680 = vmatpush.bf16.msra.mxu0 %v1361_v29  ;;  %v1349_v46 = vor.u32 %v1558_v40, %v1346_v41  ;;  %v1556_v48 = vld [vmem:[%s2064_s6 + $0x6c] sm:$0xf0]  ;;  %v1456_v49 = vld [vmem:[%s2064_s6 + $0x160] sm:$0xf] }
  0x3c   : > { %694 = vmatpush.bf16.msra.mxu1 %v1489_v33  ;;  %v1477_v50 = vor.u32 %v1590_v42, %v1474_v43  ;;  %v1588_v51 = vld [vmem:[%s2064_s6 + $0x16c] sm:$0xf0]  ;;  %v1554_v52 = vld [vmem:[%s2064_s6 + $0x64] sm:$0xf]  ;;  %v1330_v53 = vld [vmem:[%s2064_s6 + $0x70] sm:$0xf0]  ;;  %v1329_v56 = vor.u32 %v1556_v48, %v1328_v47 }
  0x3d   : > { %708 = vmatpush.bf16.msra.mxu2 %v1365_v34  ;;  %v1586_v54 = vld [vmem:[%s2064_s6 + $0x164] sm:$0xf]  ;;  %v1458_v55 = vld [vmem:[%s2064_s6 + $0x170] sm:$0xf0]  ;;  %v1457_v57 = vor.u32 %v1588_v51, %v1456_v49  ;;  %v1333_v58 = vor.u32 %v1554_v52, %v1330_v53  ;;  %v1312_v59 = vld [vmem:[%s2064_s6 + $0x40] sm:$0xf] }
  0x3e   : > { %722 = vmatpush.bf16.msra.mxu3 %v1493_v38  ;;  %v1552_v60 = vld [vmem:[%s2064_s6 + $0x4c] sm:$0xf0]  ;;  %v1440_v61 = vld [vmem:[%s2064_s6 + $0x140] sm:$0xf]  ;;  %v1461_v62 = vor.u32 %v1586_v54, %v1458_v55  ;;  %v1550_v0 = vld [vmem:[%s2064_s6 + $0x44] sm:$0xf] }
  0x3f   : > { %681 = vmatpush.bf16.msra.mxu0 %v1345_v44  ;;  %v1584_v63 = vld [vmem:[%s2064_s6 + $0x14c] sm:$0xf0]  ;;  %v1314_v1 = vld [vmem:[%s2064_s6 + $0x50] sm:$0xf0]  ;;  %v1582_v2 = vld [vmem:[%s2064_s6 + $0x144] sm:$0xf]  ;;  %v1313_v4 = vor.u32 %v1552_v60, %v1312_v59 }
  0x40   : > { %695 = vmatpush.bf16.msra.mxu1 %v1473_v45  ;;  %v1442_v3 = vld [vmem:[%s2064_s6 + $0x150] sm:$0xf0]  ;;  %v1441_v5 = vor.u32 %v1584_v63, %v1440_v61  ;;  %v1317_v6 = vor.u32 %v1550_v0, %v1314_v1  ;;  %v1296_v7 = vld [vmem:[%s2064_s6 + $0x20] sm:$0xf]  ;;  %v1548_v8 = vld [vmem:[%s2064_s6 + $0x2c] sm:$0xf0] }
  0x41   : > { %709 = vmatpush.bf16.msra.mxu2 %v1349_v46  ;;  %v1424_v9 = vld [vmem:[%s2064_s6 + $0x120] sm:$0xf]  ;;  %v1445_v10 = vor.u32 %v1582_v2, %v1442_v3  ;;  %v1580_v11 = vld [vmem:[%s2064_s6 + $0x12c] sm:$0xf0]  ;;  %v1546_v12 = vld [vmem:[%s2064_s6 + $0x24] sm:$0xf]  ;;  %v1297_v16 = vor.u32 %v1548_v8, %v1296_v7 }
  0x42   : > { %723 = vmatpush.bf16.msra.mxu3 %v1477_v50  ;;  %v1298_v13 = vld [vmem:[%s2064_s6 + $0x30] sm:$0xf0]  ;;  %v1578_v14 = vld [vmem:[%s2064_s6 + $0x124] sm:$0xf]  ;;  %v1280_v17 = vld [vmem:[%s2064_s6] sm:$0xf]  ;;  %v1425_v20 = vor.u32 %v1580_v11, %v1424_v9 }
  0x43   : > { %682 = vmatpush.bf16.msra.mxu0 %v1329_v56  ;;  %v1426_v15 = vld [vmem:[%s2064_s6 + $0x130] sm:$0xf0]  ;;  %v1544_v18 = vld [vmem:[%s2064_s6 + $0xc] sm:$0xf0]  ;;  %v1408_v19 = vld [vmem:[%s2064_s6 + $0x100] sm:$0xf]  ;;  %v1301_v21 = vor.u32 %v1546_v12, %v1298_v13 }
  0x44   : > { %696 = vmatpush.bf16.msra.mxu1 %v1457_v57  ;;  %v1576_v22 = vld [vmem:[%s2064_s6 + $0x10c] sm:$0xf0]  ;;  %v1542_v23 = vld [vmem:[%s2064_s6 + $0x4] sm:$0xf]  ;;  %v1282_v24 = vld [vmem:[%s2064_s6 + $0x10] sm:$0xf0]  ;;  %v1429_v25 = vor.u32 %v1578_v14, %v1426_v15  ;;  %v1281_v32 = vor.u32 %v1544_v18, %v1280_v17 }
  0x45   : > { %710 = vmatpush.bf16.msra.mxu2 %v1333_v58  ;;  %v1574_v26 = vld [vmem:[%s2064_s6 + $0x104] sm:$0xf]  ;;  %v1410_v27 = vld [vmem:[%s2064_s6 + $0x110] sm:$0xf0]  ;;  %v1400_v28 = vld [vmem:[%s2064_s6 + $0xe8] sm:$0xf]  ;;  %v1409_v36 = vor.u32 %v1576_v22, %v1408_v19  ;;  %v1285_v37 = vor.u32 %v1542_v23, %v1282_v24 }
  0x46   : > { %724 = vmatpush.bf16.msra.mxu3 %v1461_v62  ;;  %v1573_v29 = vld [vmem:[%s2064_s6 + $0xf4] sm:$0xf0]  ;;  %v1528_v30 = vld [vmem:[%s2064_s6 + $0x1e8] sm:$0xf]  ;;  %v1571_v33 = vld [vmem:[%s2064_s6 + $0xec] sm:$0xf]  ;;  %v1413_v41 = vor.u32 %v1574_v26, %v1410_v27 }
  0x47   : > { %683 = vmatpush.bf16.msra.mxu0 %v1313_v4  ;;  %v1605_v31 = vld [vmem:[%s2064_s6 + $0x1f4] sm:$0xf0]  ;;  %v1402_v34 = vld [vmem:[%s2064_s6 + $0xf8] sm:$0xf0]  ;;  %v1603_v35 = vld [vmem:[%s2064_s6 + $0x1ec] sm:$0xf]  ;;  %v1401_v42 = vor.u32 %v1573_v29, %v1400_v28 }
  0x48   : > { %697 = vmatpush.bf16.msra.mxu1 %v1441_v5  ;;  %v1530_v38 = vld [vmem:[%s2064_s6 + $0x1f8] sm:$0xf0]  ;;  %v1272_v39 = vld [vmem:[#allocation2] sm:$0xf]  ;;  %v1541_v40 = vld [vmem:[#allocation2 + $0x4] sm:$0xf0]  ;;  %v1529_v45 = vor.u32 %v1605_v31, %v1528_v30  ;;  %v1405_v46 = vor.u32 %v1571_v33, %v1402_v34 }
  0x49   : > { %711 = vmatpush.bf16.msra.mxu2 %v1317_v6  ;;  %v1540_v43 = vld [vmem:[#allocation2 + $0x4] sm:$0xf]  ;;  %v1274_v44 = vld [vmem:[#allocation2 + $0x8] sm:$0xf0]  ;;  %v1384_v47 = vld [vmem:[%s2064_s6 + $0xc8] sm:$0xf]  ;;  %v1533_v50 = vor.u32 %v1603_v35, %v1530_v38  ;;  %v2145_v51 = vor.u32 %v1541_v40, %v1272_v39 }
  0x4a   : > { %725 = vmatpush.bf16.msra.mxu3 %v1445_v10  ;;  %v1569_v48 = vld [vmem:[%s2064_s6 + $0xd4] sm:$0xf0]  ;;  %v1512_v49 = vld [vmem:[%s2064_s6 + $0x1c8] sm:$0xf]  ;;  %v1567_v53 = vld [vmem:[%s2064_s6 + $0xcc] sm:$0xf]  ;;  %v2150_v55 = vor.u32 %v1540_v43, %v1274_v44 }
  0x4b   : > { %684 = vmatpush.bf16.msra.mxu0 %v1297_v16  ;;  %v1601_v52 = vld [vmem:[%s2064_s6 + $0x1d4] sm:$0xf0]  ;;  %v1386_v54 = vld [vmem:[%s2064_s6 + $0xd8] sm:$0xf0]  ;;  %v1599_v56 = vld [vmem:[%s2064_s6 + $0x1cc] sm:$0xf]  ;;  %v1385_v58 = vor.u32 %v1569_v48, %v1384_v47 }
  0x4c   : > { %698 = vmatpush.bf16.msra.mxu1 %v1425_v20  ;;  %v1514_v57 = vld [vmem:[%s2064_s6 + $0x1d8] sm:$0xf0]  ;;  %v1513_v59 = vor.u32 %v1601_v52, %v1512_v49  ;;  %v1389_v60 = vor.u32 %v1567_v53, %v1386_v54  ;;  %v1368_v61 = vld [vmem:[%s2064_s6 + $0xa8] sm:$0xf]  ;;  %v1565_v62 = vld [vmem:[%s2064_s6 + $0xb4] sm:$0xf0] }
  0x4d   : > { %712 = vmatpush.bf16.msra.mxu2 %v1301_v21  ;;  %v1496_v63 = vld [vmem:[%s2064_s6 + $0x1a8] sm:$0xf]  ;;  %v1517_v0 = vor.u32 %v1599_v56, %v1514_v57  ;;  %v1597_v1 = vld [vmem:[%s2064_s6 + $0x1b4] sm:$0xf0]  ;;  %v1563_v2 = vld [vmem:[%s2064_s6 + $0xac] sm:$0xf]  ;;  %v1369_v6 = vor.u32 %v1565_v62, %v1368_v61 }
  0x4e   : > { %726 = vmatpush.bf16.msra.mxu3 %v1429_v25  ;;  %v1370_v3 = vld [vmem:[%s2064_s6 + $0xb8] sm:$0xf0]  ;;  %v1595_v4 = vld [vmem:[%s2064_s6 + $0x1ac] sm:$0xf]  ;;  %v1497_v7 = vor.u32 %v1597_v1, %v1496_v63  ;;  %v1352_v9 = vld [vmem:[%s2064_s6 + $0x88] sm:$0xf] }
  0x4f   : > { %685 = vmatpush.bf16.msra.mxu0 %v1281_v32  ;;  %v1498_v5 = vld [vmem:[%s2064_s6 + $0x1b8] sm:$0xf0]  ;;  %v1373_v8 = vor.u32 %v1563_v2, %v1370_v3  ;;  %v1561_v10 = vld [vmem:[%s2064_s6 + $0x94] sm:$0xf0]  ;;  %v1480_v11 = vld [vmem:[%s2064_s6 + $0x188] sm:$0xf] }
  0x50   : > { %699 = vmatpush.bf16.msra.mxu1 %v1409_v36  ;;  %v1501_v12 = vor.u32 %v1595_v4, %v1498_v5  ;;  %v1593_v13 = vld [vmem:[%s2064_s6 + $0x194] sm:$0xf0]  ;;  %v1559_v14 = vld [vmem:[%s2064_s6 + $0x8c] sm:$0xf]  ;;  %v1354_v15 = vld [vmem:[%s2064_s6 + $0x98] sm:$0xf0]  ;;  %v1353_v18 = vor.u32 %v1561_v10, %v1352_v9 }
  0x51   : > { %713 = vmatpush.bf16.msra.mxu2 %v1285_v37  ;;  %v1591_v16 = vld [vmem:[%s2064_s6 + $0x18c] sm:$0xf]  ;;  %v1482_v17 = vld [vmem:[%s2064_s6 + $0x198] sm:$0xf0]  ;;  %v1481_v19 = vor.u32 %v1593_v13, %v1480_v11  ;;  %v1357_v20 = vor.u32 %v1559_v14, %v1354_v15  ;;  %v1336_v21 = vld [vmem:[%s2064_s6 + $0x68] sm:$0xf] }
  0x52   : > { %727 = vmatpush.bf16.msra.mxu3 %v1413_v41  ;;  %686 = vmatmul.bf16.vlgmr.msra.gmra.mxu0 %v2145_v51  ;;  %v1557_v22 = vld [vmem:[%s2064_s6 + $0x74] sm:$0xf0]  ;;  %v1464_v23 = vld [vmem:[%s2064_s6 + $0x168] sm:$0xf]  ;;  %v1485_v24 = vor.u32 %v1591_v16, %v1482_v17  ;;  %v1555_v26 = vld [vmem:[%s2064_s6 + $0x6c] sm:$0xf] }
  0x53   : > { %734 = vmatpush.bf16.msrb.mxu0 %v1401_v42  ;;  %700 = vmatmul.bf16.vlgmr.msra.gmra.mxu1 %v2150_v55  ;;  %v1589_v25 = vld [vmem:[%s2064_s6 + $0x174] sm:$0xf0]  ;;  %v1338_v27 = vld [vmem:[%s2064_s6 + $0x78] sm:$0xf0]  ;;  %v1587_v28 = vld [vmem:[%s2064_s6 + $0x16c] sm:$0xf]  ;;  %v1337_v30 = vor.u32 %v1557_v22, %v1336_v21 }
  0x54   : > { %748 = vmatpush.bf16.msrb.mxu1 %v1529_v45  ;;  %714 = vmatmul.bf16.vlgmr.msra.gmra.mxu2 %v2145_v51  ;;  %v1466_v29 = vld [vmem:[%s2064_s6 + $0x178] sm:$0xf0]  ;;  %v1465_v31 = vor.u32 %v1589_v25, %v1464_v23  ;;  %v1341_v32 = vor.u32 %v1555_v26, %v1338_v27  ;;  %v1320_v33 = vld [vmem:[%s2064_s6 + $0x48] sm:$0xf]  ;;  %v1553_v34 = vld [vmem:[%s2064_s6 + $0x54] sm:$0xf0] }
  0x55   : > { %762 = vmatpush.bf16.msrb.mxu2 %v1405_v46  ;;  %728 = vmatmul.bf16.vlgmr.msra.gmra.mxu3 %v2150_v55  ;;  %v1448_v35 = vld [vmem:[%s2064_s6 + $0x148] sm:$0xf]  ;;  %v1469_v36 = vor.u32 %v1587_v28, %v1466_v29  ;;  %v1585_v37 = vld [vmem:[%s2064_s6 + $0x154] sm:$0xf0]  ;;  %v1551_v38 = vld [vmem:[%s2064_s6 + $0x4c] sm:$0xf]  ;;  %v1321_v42 = vor.u32 %v1553_v34, %v1320_v33 }
  0x56   : > { %776 = vmatpush.bf16.msrb.mxu3 %v1533_v50  ;;  %v1322_v39 = vld [vmem:[%s2064_s6 + $0x58] sm:$0xf0]  ;;  %v1583_v40 = vld [vmem:[%s2064_s6 + $0x14c] sm:$0xf]  ;;  %v1449_v43 = vor.u32 %v1585_v37, %v1448_v35  ;;  %v1304_v45 = vld [vmem:[%s2064_s6 + $0x28] sm:$0xf] }
  0x57   : > { %735 = vmatpush.bf16.msrb.mxu0 %v1385_v58  ;;  %v1450_v41 = vld [vmem:[%s2064_s6 + $0x158] sm:$0xf0]  ;;  %v1325_v44 = vor.u32 %v1551_v38, %v1322_v39  ;;  %v1549_v46 = vld [vmem:[%s2064_s6 + $0x34] sm:$0xf0]  ;;  %v1432_v47 = vld [vmem:[%s2064_s6 + $0x128] sm:$0xf] }
  0x58   : > { %749 = vmatpush.bf16.msrb.mxu1 %v1513_v59  ;;  %v1453_v48 = vor.u32 %v1583_v40, %v1450_v41  ;;  %v1581_v49 = vld [vmem:[%s2064_s6 + $0x134] sm:$0xf0]  ;;  %v1547_v50 = vld [vmem:[%s2064_s6 + $0x2c] sm:$0xf]  ;;  %v1306_v52 = vld [vmem:[%s2064_s6 + $0x38] sm:$0xf0]  ;;  %v1305_v56 = vor.u32 %v1549_v46, %v1304_v45 }
  0x59   : > { %763 = vmatpush.bf16.msrb.mxu2 %v1389_v60  ;;  %v1579_v53 = vld [vmem:[%s2064_s6 + $0x12c] sm:$0xf]  ;;  %v1434_v54 = vld [vmem:[%s2064_s6 + $0x138] sm:$0xf0]  ;;  %v1433_v57 = vor.u32 %v1581_v49, %v1432_v47  ;;  %v1309_v58 = vor.u32 %v1547_v50, %v1306_v52  ;;  %v1288_v59 = vld [vmem:[%s2064_s6 + $0x8] sm:$0xf] }
  0x5a   : > { %777 = vmatpush.bf16.msrb.mxu3 %v1517_v0  ;;  %v1545_v60 = vld [vmem:[%s2064_s6 + $0x14] sm:$0xf0]  ;;  %v1416_v61 = vld [vmem:[%s2064_s6 + $0x108] sm:$0xf]  ;;  %v1437_v62 = vor.u32 %v1579_v53, %v1434_v54  ;;  %v1543_v0 = vld [vmem:[%s2064_s6 + $0xc] sm:$0xf] }
  0x5b   : > { %736 = vmatpush.bf16.msrb.mxu0 %v1369_v6  ;;  %v1577_v63 = vld [vmem:[%s2064_s6 + $0x114] sm:$0xf0]  ;;  %v1290_v1 = vld [vmem:[%s2064_s6 + $0x18] sm:$0xf0]  ;;  %v1575_v2 = vld [vmem:[%s2064_s6 + $0x10c] sm:$0xf]  ;;  %v1289_v4 = vor.u32 %v1545_v60, %v1288_v59 }
  0x5c   : > { %750 = vmatpush.bf16.msrb.mxu1 %v1497_v7  ;;  %v1418_v3 = vld [vmem:[%s2064_s6 + $0x118] sm:$0xf0]  ;;  %v1417_v5 = vor.u32 %v1577_v63, %v1416_v61  ;;  %v1293_v6 = vor.u32 %v1543_v0, %v1290_v1  ;;  %s238_s7 = scalar_lea.vmem [#allocation7], %s1268_s1  ;;  %s1269_s11 = sshll.u32 %s2061_s29, 6 }
  0x5d   : > { %764 = vmatpush.bf16.msrb.mxu2 %v1373_v8  ;;  %v1421_v7 = vor.u32 %v1575_v2, %v1418_v3  ;;  %v2211_v8 = vld [vmem:[%s238_s7] sm:$0xf]  ;;  %s2357_s20 = scalar_lea.vmem [#allocation8], %s1269_s11  ;;  %s1606_s28 = sshll.u32 %s1894_s15, 5 }
  0x5e   : > { %778 = vmatpush.bf16.msrb.mxu3 %v1501_v12  ;;  %v340_v9 = vperm.slane %v2211_v8, 0  ;;  %v341_v14 = vperm.slane %v2211_v8, 1  ;;  %s1133_s5 = scalar_lea.hbm %s2467_s3, %s1606_s28  ;;  %s1134_s8 = sshll.u32 %s2357_s20, 4  ;;  %s1135_s8 = int_to_ptr.vmem [resolvable:$true] %s1134_s8 }
  0x5f   : > { %737 = vmatpush.bf16.msrb.mxu0 %v1353_v18  ;;  %s1136_s9 = sshll.u32 %s1133_s5, 4  ;;  %s1119_s15 = scalar_lea.sflag [#allocation4], %s2061_s29  ;;  %s1137_s9 = int_to_ptr.hbm [resolvable:$true] %s1136_s9 }
  0x60   : > { %751 = vmatpush.bf16.msrb.mxu1 %v1481_v19  ;;  %s1830_s10 = sshra.s32 %s1137_s9, 4  ;;  %s1836_s23 = scalar_lea.hbm %s2467_s3, 128  ;;  %s1831_s10 = int_to_ptr.hbm [resolvable:$true] %s1830_s10 }
  0x61   : > { %765 = vmatpush.bf16.msrb.mxu2 %v1357_v20  ;;  %s1832_s19 = scalar_lea.hbm %s1831_s10, 64  ;;  %p1837_p10 = scmp.lt.s32.totalorder %s1831_s10, %s2467_s3 }
  0x62   : > { %779 = vmatpush.bf16.msrb.mxu3 %v1485_v24  ;;  %p1833_p7 = scmp.ne.s32.totalorder %s1831_s10, %s1832_s19  ;;  %p1838_p11 = scmp.lt.s32.totalorder %s1836_s23, %s1832_s19 }
  0x63   : > { %738 = vmatpush.bf16.msrb.mxu0 %v1337_v30 }
  0x64   : > { %752 = vmatpush.bf16.msrb.mxu1 %v1465_v31  ;;  %p1834_p8 = pnand %p1833_p7, %p2024_p0  ;;  %p1839_p12 = por %p1838_p11, %p1837_p10 }
  0x65   : > { %766 = vmatpush.bf16.msrb.mxu2 %v1341_v32 }
  0x66   : > { %780 = vmatpush.bf16.msrb.mxu3 %v1469_v36  ;;  %p1835_p9 = pneg %p1834_p8 }
  0x67   : > { %739 = vmatpush.bf16.msrb.mxu0 %v1321_v42 }
  0x68   : > { %753 = vmatpush.bf16.msrb.mxu1 %v1449_v43  ;;  %p1840_p13 = pnand %p1839_p12, %p1835_p9 }
  0x69   : > { %767 = vmatpush.bf16.msrb.mxu2 %v1325_v44 }
  0x6a   : > { %781 = vmatpush.bf16.msrb.mxu3 %v1453_v48  ;;  %v342_v48 = vperm.slane %v2211_v8, 2 }
  0x6b   : > { %740 = vmatpush.bf16.msrb.mxu0 %v1305_v56 }
  0x6c   : > { %754 = vmatpush.bf16.msrb.mxu1 %v1433_v57 }
  0x6d   : > { %768 = vmatpush.bf16.msrb.mxu2 %v1309_v58 }
  0x6e   : > { %782 = vmatpush.bf16.msrb.mxu3 %v1437_v62 }
  0x6f   : > { %741 = vmatpush.bf16.msrb.mxu0 %v1289_v4 }
  0x70   : > { %755 = vmatpush.bf16.msrb.mxu1 %v1417_v5  ;;  %v343_v5 = vperm.slane %v2211_v8, 3 }
  0x71   : > { %769 = vmatpush.bf16.msrb.mxu2 %v1293_v6  ;;  %v1910_v6 = vmov 1.0  }
  0x72   : > { %783 = vmatpush.bf16.msrb.mxu3 %v1421_v7  ;;  %742 = vmatmul.bf16.vlgmr.msrb.gmra.mxu0 %v2145_v51 }
  0x73   : > { %756 = vmatmul.bf16.vlgmr.msrb.gmra.mxu1 %v2150_v55 }
  0x74   : > { %770 = vmatmul.bf16.vlgmr.msrb.gmra.mxu2 %v2145_v51 }
  0x75   : > { %784 = vmatmul.bf16.vlgmr.msrb.gmra.mxu3 %v2150_v55 }
  0xcf   : > { %v687_v10 = vpop.f32.mrf.mxu0 }
  0xd0   : > { %v688_v11 = vadd.f32 %v687_v10, %v340_v9  ;;  %v701_v12 = vpop.f32.mrf.mxu1 }
  0xd2   : > { %v702_v13 = vadd.f32 %v701_v12, %v688_v11 }
  0xd4   : > { %v2215_v15 = vmul.f32 0.70710677, %v702_v13  ;;  %v2249_v50 = vmul.f32 0.5, %v702_v13 }
  0xd6   : > { %v822_v16 = vand.u32 2147483647, %v2215_v15  ;;  %vm806_vm4 = vcmp.lt.f32.partialorder %v2215_v15, 0.0 }
  0xd7   : > { %v715_v17 = vpop.f32.mrf.mxu2  ;;  %v689_v18 = vpop.f32.mrf.mxu0  ;;  %v2266_v7 = vsel %vm806_vm4, -1.0, %v1910_v6 }
  0xd8   : > { %v716_v51 = vadd.f32 %v715_v17, %v341_v14  ;;  %v729_v55 = vpop.f32.mrf.mxu3  ;;  %v830_v19 = vmul.f32 0.3275911, %v822_v16  ;;  %v690_v20 = vadd.f32 %v689_v18, %v340_v9  ;;  %v703_v21 = vpop.f32.mrf.mxu1  ;;  %v1038_v39 = vsub.f32 0.0, %v822_v16 }
  0xda   : > { %v2218_v22 = vadd.f32 %v729_v55, %v716_v51  ;;  %v838_v23 = vadd.f32 1.0, %v830_v19  ;;  %v2220_v24 = vadd.f32 %v703_v21, %v690_v20  ;;  %v1046_v53 = vmul.f32 %v1038_v39, %v822_v16 }
  0xdc   : > { %v2223_v25 = vmul.f32 0.70710677, %v2218_v22  ;;  %1694 = vrcp.f32 %v838_v23  ;;  %v2227_v27 = vmul.f32 0.70710677, %v2220_v24  ;;  %vm851_vm0 = vweird.f32 %v838_v23 }
  0xdd   : > { %v857_v38 = vand.u32 2147483648, %v838_v23  ;;  %v855_v42 = vand.u32 2147483647, %v838_v23  ;;  %v1054_v3 = vmul.f32 1.442695, %v1046_v53 }
  0xde   : > { %v823_v26 = vand.u32 2147483647, %v2223_v25  ;;  %v2230_v32 = vand.u32 2147483647, %v2227_v27 }
  0xdf   : > { %v717_v28 = vpop.f32.mrf.mxu2  ;;  %v858_v46 = vor.u32 1.1754944e-38, %v857_v38  ;;  %vm856_vm3 = vcmp.eq.f32.partialorder %v855_v42, 8.507059e+37 }
  0xe0   : > { %v831_v29 = vmul.f32 0.3275911, %v823_v26  ;;  %v718_v30 = vadd.f32 %v717_v28, %v341_v14  ;;  %v731_v31 = vpop.f32.mrf.mxu3  ;;  %v834_v36 = vmul.f32 0.3275911, %v2230_v32  ;;  %v1039_v56 = vsub.f32 0.0, %v823_v26 }
  0xe1   : > { %v1042_v20 = vsub.f32 0.0, %v2230_v32 }
  0xe2   : > { %v839_v33 = vadd.f32 1.0, %v831_v29  ;;  %v2232_v34 = vadd.f32 %v731_v31, %v718_v30  ;;  %v1695_v35 = vpop.eup %1694  ;;  %v2235_v40 = vadd.f32 1.0, %v834_v36  ;;  %v1047_v14 = vmul.f32 %v1039_v56, %v823_v26 }
  0xe3   : > { %v847_v37 = vmul.f32 %v1695_v35, %v838_v23  ;;  %vm852_vm1 = vweird.f32 %v1695_v35 }
  0xe4   : > { %1696 = vrcp.f32 %v839_v33  ;;  %v2238_v43 = vmul.f32 0.70710677, %v2232_v34  ;;  %vm2241_vm2 = vmor %vm851_vm0, %vm852_vm1  ;;  %vm866_vm5 = vweird.f32 %v839_v33  ;;  %v870_v59 = vand.u32 2147483647, %v839_v33 }
  0xe5   : > { %v848_v41 = vsub.f32 1.0, %v847_v37  ;;  %1698 = vrcp.f32 %v2235_v40  ;;  %v872_v60 = vand.u32 2147483648, %v839_v33  ;;  %v917_v16 = vand.u32 2147483648, %v2235_v40 }
  0xe6   : > { %v2246_v47 = vand.u32 2147483647, %v2238_v43  ;;  %vm871_vm8 = vcmp.eq.f32.partialorder %v870_v59, 8.507059e+37  ;;  %v915_v19 = vand.u32 2147483647, %v2235_v40  ;;  %vm911_vm9 = vweird.f32 %v2235_v40 }
  0xe7   : > { %v849_v44 = vmul.f32 %v1695_v35, %v848_v41  ;;  %v873_v13 = vor.u32 1.1754944e-38, %v872_v60  ;;  %v918_v29 = vor.u32 1.1754944e-38, %v917_v16  ;;  %v1056_v36 = vmul.f32 1.442695, %v1047_v14 }
  0xe8   : > { %v835_v57 = vmul.f32 0.3275911, %v2246_v47  ;;  %vm916_vm12 = vcmp.eq.f32.partialorder %v915_v19, 8.507059e+37  ;;  %vm807_vm1 = vcmp.lt.f32.partialorder %v2223_v25, 0.0 }
  0xe9   : > { %v850_v52 = vadd.f32 %v1695_v35, %v849_v44 }
  0xea   : > { %v1697_v49 = vpop.eup %1696  ;;  %v2257_v63 = vadd.f32 1.0, %v835_v57 }
  0xeb   : > { %v862_v54 = vmul.f32 %v1697_v49, %v839_v33  ;;  %v854_v58 = vsel %vm2241_vm2, %v1695_v35, %v850_v52  ;;  %vm867_vm6 = vweird.f32 %v1697_v49  ;;  %v1699_v1 = vpop.eup %1698  ;;  %vm810_vm2 = vcmp.lt.f32.partialorder %v2227_v27, 0.0 }
  0xec   : > { %v2255_v61 = vsel %vm856_vm3, %v858_v46, %v854_v58  ;;  %v907_v10 = vmul.f32 %v1699_v1, %v2235_v40  ;;  %1700 = vrcp.f32 %v2257_v63  ;;  %vm2271_vm7 = vmor %vm866_vm5, %vm867_vm6  ;;  %vm912_vm10 = vweird.f32 %v1699_v1 }
  0xed   : > { %v863_v62 = vsub.f32 1.0, %v862_v54  ;;  %v966_v2 = vmul.f32 1.0614054, %v2255_v61  ;;  %1702 = vpow2.f32 %v1054_v3  ;;  %vm913_vm11 = vmor %vm911_vm9, %vm912_vm10  ;;  %v1050_v40 = vmul.f32 %v1042_v20, %v2230_v32 }
  0xee   : > { %v908_v15 = vsub.f32 1.0, %v907_v10  ;;  %v930_v45 = vand.u32 2147483647, %v2257_v63  ;;  %v932_v59 = vand.u32 2147483648, %v2257_v63  ;;  %vm926_vm14 = vweird.f32 %v2257_v63 }
  0xef   : > { %v743_v0 = vpop.f32.mrf.mxu0  ;;  %v864_v9 = vmul.f32 %v1697_v49, %v863_v62  ;;  %v974_v11 = vadd.f32 -1.4531521, %v966_v2 }
  0xf0   : > { %v744_v4 = vadd.f32 %v743_v0, %v342_v48  ;;  %v757_v17 = vpop.f32.mrf.mxu1  ;;  %v909_v23 = vmul.f32 %v1699_v1, %v908_v15  ;;  %v933_v16 = vor.u32 1.1754944e-38, %v932_v59  ;;  %vm931_vm0 = vcmp.eq.f32.partialorder %v930_v45, 8.507059e+37 }
  0xf1   : > { %v865_v51 = vadd.f32 %v1697_v49, %v864_v9  ;;  %v982_v55 = vmul.f32 %v974_v11, %v2255_v61  ;;  %v1062_v11 = vmul.f32 1.442695, %v1050_v40 }
  0xf2   : > { %v2276_v18 = vadd.f32 %v757_v17, %v744_v4  ;;  %v1701_v33 = vpop.eup %1700  ;;  %v910_v37 = vadd.f32 %v1699_v1, %v909_v23  ;;  %v1043_v4 = vsub.f32 0.0, %v2246_v47  ;;  %v2326_v23 = vmul.f32 0.5, %v2218_v22 }
  0xf3   : > { %v869_v21 = vsel %vm2271_vm7, %v1697_v49, %v865_v51  ;;  %v990_v26 = vadd.f32 1.4214138, %v982_v55  ;;  %v922_v41 = vmul.f32 %v1701_v33, %v2257_v63  ;;  %v1703_v52 = vpop.eup %1702  ;;  %vm927_vm13 = vweird.f32 %v1701_v33 }
  0xf4   : > { %v2284_v28 = vsel %vm871_vm8, %v873_v13, %v869_v21  ;;  %v2287_v30 = vmul.f32 0.70710677, %v2276_v18  ;;  %v914_v44 = vsel %vm913_vm11, %v1699_v1, %v910_v37  ;;  %vm928_vm15 = vmor %vm926_vm14, %vm927_vm13  ;;  %v1051_v63 = vmul.f32 %v1043_v4, %v2246_v47 }
  0xf5   : > { %v967_v35 = vmul.f32 1.0614054, %v2284_v28  ;;  %v998_v39 = vmul.f32 %v990_v26, %v2255_v61  ;;  %v2299_v54 = vsel %vm916_vm12, %v918_v29, %v914_v44  ;;  %v923_v56 = vsub.f32 1.0, %v922_v41 }
  0xf6   : > { %v2297_v46 = vand.u32 2147483647, %v2287_v30  ;;  %v970_v32 = vmul.f32 1.0614054, %v2299_v54  ;;  %v815_v4 = vsel %vm807_vm1, -1.0, %v1910_v6  ;;  %vm811_vm7 = vcmp.lt.f32.partialorder %v2238_v43, 0.0 }
  0xf7   : > { %v771_v31 = vpop.f32.mrf.mxu2  ;;  %v975_v42 = vadd.f32 -1.4531521, %v967_v35  ;;  %v1006_v53 = vadd.f32 -0.28449672, %v998_v39  ;;  %v924_v0 = vmul.f32 %v1701_v33, %v923_v56  ;;  %vm808_vm12 = vcmp.lt.f32.partialorder %v2287_v30, 0.0 }
  0xf8   : > { %v772_v38 = vadd.f32 %v771_v31, %v343_v5  ;;  %v785_v49 = vpop.f32.mrf.mxu3  ;;  %v832_v60 = vmul.f32 0.3275911, %v2297_v46  ;;  %v978_v3 = vadd.f32 -1.4531521, %v970_v32  ;;  %v745_v31 = vpop.f32.mrf.mxu0 }
  0xf9   : > { %v983_v58 = vmul.f32 %v975_v42, %v2284_v28  ;;  %v1014_v62 = vmul.f32 %v1006_v53, %v2255_v61  ;;  %v925_v12 = vadd.f32 %v1701_v33, %v924_v0  ;;  %v746_v42 = vadd.f32 %v745_v31, %v342_v48  ;;  %v759_v48 = vpop.f32.mrf.mxu1 }
  0xfa   : > { %v2301_v57 = vadd.f32 %v785_v49, %v772_v38  ;;  %v2312_v9 = vadd.f32 1.0, %v832_v60  ;;  %v986_v14 = vmul.f32 %v978_v3, %v2299_v54  ;;  %v1064_v38 = vmul.f32 1.442695, %v1051_v63 }
  0xfb   : > { %v991_v2 = vadd.f32 1.4214138, %v983_v58  ;;  %v1022_v10 = vadd.f32 0.2548296, %v1014_v62  ;;  %v929_v51 = vsel %vm928_vm15, %v1701_v33, %v925_v12  ;;  %v2350_v3 = vadd.f32 %v759_v48, %v746_v42 }
  0xfc   : > { %v2309_v1 = vmul.f32 0.70710677, %v2301_v57  ;;  %1704 = vrcp.f32 %v2312_v9  ;;  %v994_v19 = vadd.f32 1.4214138, %v986_v14  ;;  %v2322_v20 = vsel %vm931_vm0, %v933_v16, %v929_v51 }
  0xfd   : > { %v999_v13 = vmul.f32 %v991_v2, %v2284_v28  ;;  %v1030_v17 = vmul.f32 %v1022_v10, %v2255_v61  ;;  %1706 = vpow2.f32 %v1056_v36  ;;  %v971_v26 = vmul.f32 1.0614054, %v2322_v20 }
  0xfe   : > { %v2320_v15 = vand.u32 2147483647, %v2309_v1  ;;  %v1002_v29 = vmul.f32 %v994_v19, %v2299_v54  ;;  %1708 = vpow2.f32 %v1062_v11  ;;  %vm881_vm3 = vweird.f32 %v2312_v9 }
  0xff   : > { %v1007_v55 = vadd.f32 -0.28449672, %v999_v13  ;;  %v1070_v21 = vmul.f32 %v1703_v52, %v1030_v17  ;;  %v979_v47 = vadd.f32 -1.4531521, %v971_v26  ;;  %v885_v49 = vand.u32 2147483647, %v2312_v9  ;;  %v773_v16 = vpop.f32.mrf.mxu2 }
 0x100   : > { %v833_v35 = vmul.f32 0.3275911, %v2320_v15  ;;  %v1010_v36 = vadd.f32 -0.28449672, %v1002_v29  ;;  %v794_v11 = vmul.f32 0.5, %v2220_v24  ;;  %vm809_vm1 = vcmp.lt.f32.partialorder %v2309_v1, 0.0 }
 0x101   : > { %v1015_v61 = vmul.f32 %v1007_v55, %v2284_v28  ;;  %v1078_v33 = vsub.f32 1.0, %v1070_v21  ;;  %v987_v40 = vmul.f32 %v979_v47, %v2322_v20  ;;  %vm886_vm6 = vcmp.eq.f32.partialorder %v885_v49, 8.507059e+37 }
 0x102   : > { %v1705_v22 = vpop.eup %1704  ;;  %v1018_v45 = vmul.f32 %v1010_v36, %v2299_v54  ;;  %v2344_v52 = vadd.f32 1.0, %v833_v35  ;;  %v2369_v27 = vmul.f32 0.70710677, %v2350_v3 }
 0x103   : > { %v1023_v37 = vadd.f32 0.2548296, %v1015_v61  ;;  %v1086_v39 = vmul.f32 %v1078_v33, %v2266_v7  ;;  %v877_v41 = vmul.f32 %v1705_v22, %v2312_v9  ;;  %v1707_v53 = vpop.eup %1706  ;;  %v995_v58 = vadd.f32 1.4214138, %v987_v40 }
 0x104   : > { %v887_v7 = vand.u32 2147483648, %v2312_v9  ;;  %v1026_v60 = vadd.f32 0.2548296, %v1018_v45  ;;  %vm882_vm4 = vweird.f32 %v1705_v22  ;;  %1710 = vrcp.f32 %v2344_v52  ;;  %v1709_v62 = vpop.eup %1708 }
 0x105   : > { %v1031_v44 = vmul.f32 %v1023_v37, %v2284_v28  ;;  %v1094_v56 = vadd.f32 1.0, %v1086_v39  ;;  %v878_v32 = vsub.f32 1.0, %v877_v41  ;;  %v1003_v0 = vmul.f32 %v995_v58, %v2322_v20  ;;  %vm883_vm5 = vmor %vm881_vm3, %vm882_vm4  ;;  %v787_v39 = vpop.f32.mrf.mxu3 }
 0x106   : > { %v1034_v12 = vmul.f32 %v1026_v60, %v2299_v54  ;;  %1712 = vpow2.f32 %v1064_v38  ;;  %v888_v24 = vor.u32 1.1754944e-38, %v887_v7  ;;  %v1040_v54 = vsub.f32 0.0, %v2297_v46 }
 0x107   : > { %v1071_v59 = vmul.f32 %v1707_v53, %v1031_v44  ;;  %v1102_v28 = vmul.f32 %v1094_v56, %v2249_v50  ;;  %v879_v2 = vmul.f32 %v1705_v22, %v878_v32  ;;  %v818_v50 = vsel %vm810_vm2, -1.0, %v1910_v6 }
 0x108   : > { %v1011_v13 = vadd.f32 -0.28449672, %v1003_v0  ;;  %v1074_v25 = vmul.f32 %v1709_v62, %v1034_v12  ;;  %v774_v61 = vadd.f32 %v773_v16, %v343_v5  ;;  %v1048_v35 = vmul.f32 %v1040_v54, %v2297_v46 }
 0x109   : > { %v1079_v10 = vsub.f32 1.0, %v1071_v59  ;;  %1110 = vst [vmem:[%s2357_s20] sm:$0xff] %v1102_v28  ;;  %v880_v14 = vadd.f32 %v1705_v22, %v879_v2  ;;  %v900_v5 = vand.u32 2147483647, %v2344_v52  ;;  %v902_v41 = vand.u32 2147483648, %v2344_v52 }
 0x10a   : > { %v1019_v51 = vmul.f32 %v1011_v13, %v2322_v20  ;;  %v1711_v19 = vpop.eup %1710  ;;  %v1082_v21 = vsub.f32 1.0, %v1074_v25  ;;  %v2385_v42 = vadd.f32 %v787_v39, %v774_v61  ;;  %vm896_vm9 = vweird.f32 %v2344_v52 }
 0x10b   : > { %v1087_v17 = vmul.f32 %v1079_v10, %v815_v4  ;;  %v884_v55 = vsel %vm883_vm5, %v1705_v22, %v880_v14  ;;  %v892_v31 = vmul.f32 %v1711_v19, %v2344_v52  ;;  %v2378_v22 = vand.u32 2147483647, %v2369_v27 }
 0x10c   : > { %v889_v26 = vsel %vm886_vm6, %v888_v24, %v884_v55  ;;  %v1027_v9 = vadd.f32 0.2548296, %v1019_v51  ;;  %v1090_v47 = vmul.f32 %v1082_v21, %v818_v50  ;;  %v1713_v37 = vpop.eup %1712  ;;  %vm897_vm8 = vweird.f32 %v1711_v19 }
 0x10d   : > { %v1095_v63 = vadd.f32 1.0, %v1087_v17  ;;  %v968_v29 = vmul.f32 1.0614054, %v889_v26  ;;  %v893_v38 = vsub.f32 1.0, %v892_v31  ;;  %v1058_v7 = vmul.f32 1.442695, %v1048_v35  ;;  %vm898_vm10 = vmor %vm896_vm9, %vm897_vm8 }
 0x10e   : > { %v1035_v36 = vmul.f32 %v1027_v9, %v2322_v20  ;;  %v1098_v40 = vadd.f32 1.0, %v1090_v47  ;;  %v819_v20 = vsel %vm811_vm7, -1.0, %v1910_v6  ;;  %v903_v59 = vor.u32 1.1754944e-38, %v902_v41 }
 0x10f   : > { %v1103_v33 = vmul.f32 %v1095_v63, %v2326_v23  ;;  %v976_v8 = vadd.f32 -1.4531521, %v968_v29  ;;  %v836_v23 = vmul.f32 0.3275911, %v2378_v22  ;;  %v894_v45 = vmul.f32 %v1711_v19, %v893_v38 }
 0x110   : > { %v1075_v46 = vmul.f32 %v1713_v37, %v1035_v36  ;;  %v1106_v49 = vmul.f32 %v1098_v40, %v794_v11  ;;  %v2393_v60 = vmul.f32 0.70710677, %v2385_v42  ;;  %vm901_vm11 = vcmp.eq.f32.partialorder %v900_v5, 8.507059e+37 }
 0x111   : > { %1111 = vst [vmem:[%s2357_s20 + $0x8] sm:$0xff] %v1103_v33  ;;  %v984_v44 = vmul.f32 %v976_v8, %v889_v26  ;;  %v844_v53 = vadd.f32 1.0, %v836_v23  ;;  %v895_v32 = vadd.f32 %v1711_v19, %v894_v45  ;;  %v1041_v0 = vsub.f32 0.0, %v2320_v15 }
 0x112   : > { %v1083_v56 = vsub.f32 1.0, %v1075_v46  ;;  %1114 = vst [vmem:[%s2357_s20 + $0x20] sm:$0xff] %v1106_v49  ;;  %v795_v2 = vmul.f32 0.5, %v2232_v34  ;;  %v2398_v11 = vand.u32 2147483647, %v2393_v60  ;;  %v816_v37 = vsel %vm808_vm12, -1.0, %v1910_v6 }
 0x113   : > { %v992_v58 = vadd.f32 1.4214138, %v984_v44  ;;  %1714 = vrcp.f32 %v844_v53  ;;  %v899_v28 = vsel %vm898_vm10, %v1711_v19, %v895_v32  ;;  %v1049_v16 = vmul.f32 %v1041_v0, %v2320_v15 }
 0x114   : > { %v1091_v48 = vmul.f32 %v1083_v56, %v819_v20  ;;  %v904_v43 = vsel %vm901_vm11, %v903_v59, %v899_v28  ;;  %1716 = vpow2.f32 %v1058_v7  ;;  %v837_v17 = vmul.f32 0.3275911, %v2398_v11 }
 0x115   : > { %v1000_v62 = vmul.f32 %v992_v58, %v889_v26  ;;  %v969_v10 = vmul.f32 1.0614054, %v904_v43  ;;  %v1060_v21 = vmul.f32 1.442695, %v1049_v16  ;;  %v945_v61 = vand.u32 2147483647, %v844_v53 }
 0x116   : > { %v1099_v4 = vadd.f32 1.0, %v1091_v48  ;;  %v845_v34 = vadd.f32 1.0, %v837_v17  ;;  %v947_v9 = vand.u32 2147483648, %v844_v53  ;;  %vm941_vm14 = vweird.f32 %v844_v53 }
 0x117   : > { %v1008_v52 = vadd.f32 -0.28449672, %v1000_v62  ;;  %v977_v13 = vadd.f32 -1.4531521, %v969_v10  ;;  %vm946_vm0 = vcmp.eq.f32.partialorder %v945_v61, 8.507059e+37  ;;  %v792_v39 = vmul.f32 0.5, %v2276_v18 }
 0x118   : > { %v1107_v12 = vmul.f32 %v1099_v4, %v795_v2  ;;  %1718 = vrcp.f32 %v845_v34  ;;  %v1044_v41 = vsub.f32 0.0, %v2378_v22  ;;  %v960_v32 = vand.u32 2147483647, %v845_v34 }
 0x119   : > { %v1016_v50 = vmul.f32 %v1008_v52, %v889_v26  ;;  %v1715_v14 = vpop.eup %1714  ;;  %v985_v24 = vmul.f32 %v977_v13, %v904_v43  ;;  %1720 = vpow2.f32 %v1060_v21  ;;  %v962_v7 = vand.u32 2147483648, %v845_v34 }
 0x11a   : > { %1115 = vst [vmem:[%s2357_s20 + $0x28] sm:$0xff] %v1107_v12  ;;  %v937_v54 = vmul.f32 %v1715_v14, %v844_v53  ;;  %v1717_v63 = vpop.eup %1716  ;;  %vm942_vm13 = vweird.f32 %v1715_v14  ;;  %v1052_v58 = vmul.f32 %v1044_v41, %v2378_v22  ;;  %vm956_vm3 = vweird.f32 %v845_v34 }
 0x11b   : > { %v1024_v25 = vadd.f32 0.2548296, %v1016_v50  ;;  %v993_v55 = vadd.f32 1.4214138, %v985_v24  ;;  %vm943_vm15 = vmor %vm941_vm14, %vm942_vm13  ;;  %v963_v4 = vor.u32 1.1754944e-38, %v962_v7  ;;  %vm961_vm5 = vcmp.eq.f32.partialorder %v960_v32, 8.507059e+37 }
 0x11c   : > { %v938_v19 = vsub.f32 1.0, %v937_v54  ;;  %v1066_v2 = vmul.f32 1.442695, %v1052_v58  ;;  %v1045_v12 = vsub.f32 0.0, %v2398_v11  ;;  %v793_v50 = vmul.f32 0.5, %v2301_v57 }
 0x11d   : > { %v1032_v51 = vmul.f32 %v1024_v25, %v889_v26  ;;  %v1001_v31 = vmul.f32 %v993_v55, %v904_v43  ;;  %v948_v26 = vor.u32 1.1754944e-38, %v947_v9  ;;  %vm812_vm6 = vcmp.lt.f32.partialorder %v2369_v27, 0.0 }
 0x11e   : > { %v939_v15 = vmul.f32 %v1715_v14, %v938_v19  ;;  %v1719_v5 = vpop.eup %1718  ;;  %1722 = vpow2.f32 %v1066_v2  ;;  %v1053_v54 = vmul.f32 %v1045_v12, %v2398_v11  ;;  %vm813_vm7 = vcmp.lt.f32.partialorder %v2393_v60, 0.0 }
 0x11f   : > { %v1072_v29 = vmul.f32 %v1717_v63, %v1032_v51  ;;  %v1009_v47 = vadd.f32 -0.28449672, %v1001_v31  ;;  %v952_v45 = vmul.f32 %v1719_v5, %v845_v34  ;;  %v1721_v56 = vpop.eup %1720  ;;  %vm957_vm2 = vweird.f32 %v1719_v5 }
 0x120   : > { %v940_v35 = vadd.f32 %v1715_v14, %v939_v15  ;;  %vm958_vm4 = vmor %vm956_vm3, %vm957_vm2  ;;  %v1068_v21 = vmul.f32 1.442695, %v1053_v54  ;;  %v820_v31 = vsel %vm812_vm6, -1.0, %v1910_v6 }
 0x121   : > { %v1080_v33 = vsub.f32 1.0, %v1072_v29  ;;  %v1017_v8 = vmul.f32 %v1009_v47, %v904_v43  ;;  %v953_v53 = vsub.f32 1.0, %v952_v45 }
 0x122   : > { %v944_v38 = vsel %vm943_vm15, %v1715_v14, %v940_v35  ;;  %1724 = vpow2.f32 %v1068_v21 }
 0x123   : > { %v1088_v36 = vmul.f32 %v1080_v33, %v816_v37  ;;  %v949_v40 = vsel %vm946_vm0, %v948_v26, %v944_v38  ;;  %v1025_v46 = vadd.f32 0.2548296, %v1017_v8  ;;  %v954_v48 = vmul.f32 %v1719_v5, %v953_v53 }
 0x124   : > { %v972_v44 = vmul.f32 1.0614054, %v949_v40  ;;  %v1723_v63 = vpop.eup %1722  ;;  %v796_v33 = vmul.f32 0.5, %v2350_v3  ;;  %v821_v3 = vsel %vm813_vm7, -1.0, %v1910_v6 }
 0x125   : > { %v1096_v23 = vadd.f32 1.0, %v1088_v36  ;;  %v1033_v49 = vmul.f32 %v1025_v46, %v904_v43  ;;  %v955_v0 = vadd.f32 %v1719_v5, %v954_v48  ;;  %v817_v43 = vsel %vm809_vm1, -1.0, %v1910_v6 }
 0x126   : > { %v980_v20 = vadd.f32 -1.4531521, %v972_v44 }
 0x127   : > { %v1104_v30 = vmul.f32 %v1096_v23, %v792_v39  ;;  %v1073_v18 = vmul.f32 %v1721_v56, %v1033_v49  ;;  %v959_v22 = vsel %vm958_vm4, %v1719_v5, %v955_v0  ;;  %v797_v5 = vmul.f32 0.5, %v2385_v42 }
 0x128   : > { %v988_v59 = vmul.f32 %v980_v20, %v949_v40  ;;  %v964_v10 = vsel %vm961_vm5, %v963_v4, %v959_v22  ;;  %v1725_v27 = vpop.eup %1724 }
 0x129   : > { %1112 = vst [vmem:[%s2357_s20 + $0x10] sm:$0xff] %v1104_v30  ;;  %v1081_v62 = vsub.f32 1.0, %v1073_v18  ;;  %v973_v16 = vmul.f32 1.0614054, %v964_v10 }
 0x12a   : > { %v996_v28 = vadd.f32 1.4214138, %v988_v59 }
 0x12b   : > { %v1089_v1 = vmul.f32 %v1081_v62, %v817_v43  ;;  %v981_v24 = vadd.f32 -1.4531521, %v973_v16 }
 0x12c   : > { %v1004_v52 = vmul.f32 %v996_v28, %v949_v40 }
 0x12d   : > { %v1097_v13 = vadd.f32 1.0, %v1089_v1  ;;  %v989_v51 = vmul.f32 %v981_v24, %v964_v10 }
 0x12e   : > { %v1012_v14 = vadd.f32 -0.28449672, %v1004_v52 }
 0x12f   : > { %v1105_v17 = vmul.f32 %v1097_v13, %v793_v50  ;;  %v997_v19 = vadd.f32 1.4214138, %v989_v51 }
 0x130   : > { %v1020_v25 = vmul.f32 %v1012_v14, %v949_v40 }
 0x131   : > { %1113 = vst [vmem:[%s2357_s20 + $0x18] sm:$0xff] %v1105_v17  ;;  %v1005_v61 = vmul.f32 %v997_v19, %v964_v10 }
 0x132   : > { %v1028_v34 = vadd.f32 0.2548296, %v1020_v25 }
 0x133   : > { %v1013_v29 = vadd.f32 -0.28449672, %v1005_v61 }
 0x134   : > { %v1036_v55 = vmul.f32 %v1028_v34, %v949_v40 }
 0x135   : > { %v1021_v15 = vmul.f32 %v1013_v29, %v964_v10 }
 0x136   : > { %v1076_v57 = vmul.f32 %v1723_v63, %v1036_v55 }
 0x137   : > { %v1029_v35 = vadd.f32 0.2548296, %v1021_v15 }
 0x138   : > { %v1084_v9 = vsub.f32 1.0, %v1076_v57 }
 0x139   : > { %v1037_v26 = vmul.f32 %v1029_v35, %v964_v10 }
 0x13a   : > { %v1092_v11 = vmul.f32 %v1084_v9, %v820_v31 }
 0x13b   : > { %v1077_v36 = vmul.f32 %v1725_v27, %v1037_v26 }
 0x13c   : > { %v1100_v47 = vadd.f32 1.0, %v1092_v11 }
 0x13d   : > { %v1085_v8 = vsub.f32 1.0, %v1077_v36 }
 0x13e   : > { %v1108_v37 = vmul.f32 %v1100_v47, %v796_v33 }
 0x13f   : > { %v1093_v38 = vmul.f32 %v1085_v8, %v821_v3 }
 0x140   : > { %1116 = vst [vmem:[%s2357_s20 + $0x30] sm:$0xff] %v1108_v37 }
 0x141   : > { %v1101_v39 = vadd.f32 1.0, %v1093_v38 }
 0x143   : > { %v1109_v40 = vmul.f32 %v1101_v39, %v797_v5 }
 0x145   : > { %1117 = vst [vmem:[%s2357_s20 + $0x38] sm:$0xff] %v1109_v40 }
 0x146   : > { %1843 = shalt.err (!%p1840_p13)
}
 0x147   : > { %s1911_s29 = smov 512   ;;  %s1912_s6 = smov 1024  }
 0x148   : > { %s1913_s1 = smov 32  }
 0x149   : > { %1615 = dma.vmem_to_hbm [thread:$0]  (%p2024_p0), %s1135_s8, 1024, %s1137_s9, %s1119_s15, %s1911_s29, %s1912_s6, %s1913_s1  }
 0x14a PF: > { %s1151_s7 = sand.u32 1, %s1882_s12   ;;  %p1629_p4 = pnand %p1259_p3, %p2028_p2 }
 0x14b   : > { %s1152_s11 = scalar_lea.sflag [#allocation4], %s1151_s7 }
 0x14c   : > { %p1630_p5 = pneg %p1629_p4 }
 0x14e   : > { %1877 = dma.done.wait (%p1630_p5), %s1152_s11, 1024  }
 0x14f   : > { %1879 = vsyncadd (%p1630_p5), %s1152_s11, 4294966272  ;;  %s20_s17 = sadd.s32 1, %s1902_s17   ;;  %s2482_s12 = smov %s1886_s13 }
 0x150   : > { %p17_p1 = scmp.ge.s32.totalorder %s20_s17, 4   ;;  %s2483_s13 = smov %s1890_s14 }
 0x151   : > { %s2484_s14 = smov %s1986_s25  ;;  %s2485_s15 = smov %s1898_s16 }
 0x152   : > { %s2486_s16 = smov %s2488_s18  ;;  %19 = sbr.rel (!%p17_p1) target bundleno = 10 (0xa), region = 94 }
 0x157   :  { %1158 = vsyncpa [#allocation3], 1 }
 0x158   :  { %1160 = vsyncpa [#allocation3 + $0x1], 1 }
 0x159   :  { %1161 = vsyncpa [#allocation6], 1 }
 0x15a   :  { %1163 = vsyncpa [#allocation6 + $0x1], 1 }
 0x15b   :  { %1164 = vsyncpa [#allocation4], 1 }
 0x15c   :  { %1166 = vsyncpa [#allocation4 + $0x1], 1 }

</bundles_post_ra>
